<compile_context>
chip_gen: v5e
topology: v5e:2x2
jax: 0.10.0
libtpu: 0.0.40
codegen_flags: <defaults>
</compile_context>

<pallas_src>
import functools

import jax
import jax.numpy as jnp
from jax import lax
from jax.experimental import pallas as pl
from jax.experimental.pallas import tpu as pltpu

# Conservative VMEM budgeting that is valid across generations:
#   v7x has only 64 MiB physical VMEM, v5e's default scoped limit is 16 MiB.
_VMEM_LIMIT_BYTES = 48 * 1024 * 1024     # explicit scoped-VMEM limit
_STREAM_BUDGET_BYTES = 36 * 1024 * 1024  # budget for the double-buffered streamed inputs
_MAX_COL_TILE = 8192                     # lanes per block before we tile C
_MAX_ROW_TILE = 512                      # ~85% of HBM roofline measured at 512+ rows


def _round_up(x, m):
    return ((x + m - 1) // m) * m


def _bce_loss_kernel(*refs, has_mask, c_true, col_tile, lane_mask_needed):
    """Elementwise BCE-with-logits (pos_weight) + masked row reduction over C blocks.

    loss = (1 - y) * x + (1 + (pw - 1) * y) * softplus(-x)
    with the numerically stable softplus(-x) = max(-x, 0) + log1p(exp(-|x|)).
    num/den are accumulated in VMEM scratch across the column-grid axis.
    """
    if has_mask:
        logits_ref, labels_ref, pwm1_ref, mask_ref, out_ref, num_acc, den_acc = refs
    else:
        logits_ref, labels_ref, pwm1_ref, out_ref, num_acc = refs
        mask_ref = None
        den_acc = None

    k = pl.program_id(1)

    @pl.when(k == 0)
    def _init():
        num_acc[...] = jnp.zeros_like(num_acc)
        if has_mask:
            den_acc[...] = jnp.zeros_like(den_acc)

    x = logits_ref[...].astype(jnp.float32)
    y = labels_ref[...].astype(jnp.float32)
    pwm1 = pwm1_ref[...].astype(jnp.float32)     # (1, col_tile) == pos_weight - 1

    sp_neg_x = jnp.maximum(-x, 0.0) + jnp.log1p(jnp.exp(-jnp.abs(x)))
    loss = (1.0 - y) * x + (1.0 + pwm1 * y) * sp_neg_x

    if has_mask:
        m = mask_ref[...].astype(jnp.float32)
        num_acc[...] += jnp.sum(loss * m, axis=-1, keepdims=True)
        den_acc[...] += jnp.sum(m, axis=-1, keepdims=True)
    else:
        if lane_mask_needed:
            # C was padded up to a multiple of col_tile; zero the padded lanes.
            lanes = lax.broadcasted_iota(jnp.int32, loss.shape, 1) + k * col_tile
            loss = jnp.where(lanes < c_true, loss, 0.0)
        num_acc[...] += jnp.sum(loss, axis=-1, keepdims=True)

    @pl.when(k == pl.num_programs(1) - 1)
    def _finalize():
        if has_mask:
            out_ref[...] = num_acc[...] / (den_acc[...] + 1e-8)
        else:
            out_ref[...] = num_acc[...] * (1.0 / c_true)


def my_bce_loss(logits, labels, mask=None, pos_weight=None, *,
                row_tile=None, col_tile=None):
    """JAX wrapper reproducing MyBCELoss(freq, reduce_dim=-1).forward(logits, labels, mask).

    logits, labels, mask: (B, C) arrays (f32 or bf16; mask may be int/bool).
    pos_weight: (C,) / scalar / None.  Returns (B,) float32 per-row reduced loss.
    """
    B, C = logits.shape
    has_mask = mask is not None

    # Accept low-precision inputs as-is (no pre-cast to f32 in HBM); the kernel
    # upcasts per-tile.  Bool masks are stored as int8 for a simple load path.
    if has_mask and mask.dtype == jnp.bool_:
        mask = mask.astype(jnp.int8)

    # --- tile selection: mem-bound kernel, maximize block size within VMEM ---
    if col_tile is None:
        col_tile = C if C <= _MAX_COL_TILE else _MAX_COL_TILE
    c_pad = C if col_tile == C else _round_up(C, col_tile)

    itembytes = logits.dtype.itemsize + labels.dtype.itemsize
    if has_mask:
        itembytes += mask.dtype.itemsize
    if row_tile is None:
        max_rows = max(16, _STREAM_BUDGET_BYTES // (2 * col_tile * itembytes))
        row_tile = min(_MAX_ROW_TILE, (max_rows // 16) * 16, _round_up(B, 16))
        row_tile = max(16, row_tile)
    b_pad = _round_up(B, row_tile)

    def _pad(a, rows, cols):
        pr, pc = rows - a.shape[0], cols - a.shape[1]
        if pr or pc:
            a = jnp.pad(a, ((0, pr), (0, pc)))
        return a

    args = [_pad(logits, b_pad, c_pad), _pad(labels, b_pad, c_pad)]

    # Hoist (pos_weight - 1) into the wrapper; padded lanes get 0 (i.e. pw = 1).
    if pos_weight is None:
        pwm1 = jnp.zeros((1, c_pad), jnp.float32)
    else:
        pw = jnp.broadcast_to(
            jnp.asarray(pos_weight, jnp.float32).reshape(1, -1), (1, C))
        pwm1 = _pad(pw - 1.0, 1, c_pad)
    args.append(pwm1)

    in_specs = [
        pl.BlockSpec((row_tile, col_tile), lambda i, k: (i, k)),   # logits
        pl.BlockSpec((row_tile, col_tile), lambda i, k: (i, k)),   # labels
        pl.BlockSpec((1, col_tile), lambda i, k: (0, k)),          # pos_weight - 1
    ]
    scratch = [pltpu.VMEM((row_tile, 1), jnp.float32)]             # num accumulator
    if has_mask:
        args.append(_pad(mask, b_pad, c_pad))
        in_specs.append(pl.BlockSpec((row_tile, col_tile), lambda i, k: (i, k)))
        scratch.append(pltpu.VMEM((row_tile, 1), jnp.float32))     # den accumulator

    kernel = functools.partial(
        _bce_loss_kernel,
        has_mask=has_mask,
        c_true=C,
        col_tile=col_tile,
        lane_mask_needed=(not has_mask) and (c_pad != C),
    )

    grid = (b_pad // row_tile, c_pad // col_tile)
    out = pl.pallas_call(
        kernel,
        out_shape=jax.ShapeDtypeStruct((b_pad, 1), jnp.float32),
        grid_spec=pltpu.PrefetchScalarGridSpec(
            num_scalar_prefetch=0,
            grid=grid,
            in_specs=in_specs,
            out_specs=pl.BlockSpec((row_tile, 1), lambda i, k: (i, 0)),
            scratch_shapes=scratch,
        ),
        compiler_params=pltpu.CompilerParams(
            dimension_semantics=("parallel", "arbitrary"),
            vmem_limit_bytes=_VMEM_LIMIT_BYTES,
        ),
    )(*args)
    return out[:B, 0]


def _reference(logits, labels, mask, pos_weight):
    x = logits.astype(jnp.float32)
    y = labels.astype(jnp.float32)
    pw = jnp.ones((x.shape[-1],), jnp.float32) if pos_weight is None else pos_weight
    sp = jnp.maximum(-x, 0.0) + jnp.log1p(jnp.exp(-jnp.abs(x)))
    loss = (1.0 - y) * x + (1.0 + (pw - 1.0) * y) * sp
    if mask is not None:
        m = mask.astype(jnp.float32)
        return (loss * m).sum(-1) / (m.sum(-1) + 1e-8)
    return loss.mean(-1)


if __name__ == "__main__":
    key = jax.random.PRNGKey(0)
    k1, k2, k3, k4 = jax.random.split(key, 4)

    B, C = 8, 128
    logits = jax.random.normal(k1, (B, C), dtype=jnp.float32)
    labels = (jax.random.uniform(k2, (B, C)) > 0.5).astype(jnp.float32)
    mask = (jax.random.uniform(k3, (B, C)) > 0.3).astype(jnp.float32)

    # Deterministic "freq" parameter -> pos_weight = (1 - freq) / (freq + 1e-8)
    freq = jax.random.uniform(k4, (C,), minval=0.05, maxval=0.95)
    pos_weight = (1.0 - freq) / (freq + 1e-8)

    out = my_bce_loss(logits, labels, mask=mask, pos_weight=pos_weight)
    jax.block_until_ready(out)
    ref = _reference(logits, labels, mask, pos_weight)
    assert jnp.allclose(out, ref, rtol=1e-5, atol=1e-5), "masked path mismatch"

    # mask=None path: no dummy mask is DMA'd, mean over reduce_dim.
    out_no_mask = my_bce_loss(logits, labels, mask=None, pos_weight=pos_weight)
    jax.block_until_ready(out_no_mask)
    ref_no_mask = _reference(logits, labels, None, pos_weight)
    assert jnp.allclose(out_no_mask, ref_no_mask, rtol=1e-5, atol=1e-5), "no-mask path mismatch"

    print("KERNEL_OK")
</pallas_src>

<mosaic_0001>
module attributes {stable_mosaic.version = 11 : i64} {
  func.func @_bce_loss_kernel(%arg0: i32, %arg1: i32, %arg2: memref<16x128xf32, #tpu.memory_space<vmem>>, %arg3: memref<16x128xf32, #tpu.memory_space<vmem>>, %arg4: memref<1x128xf32, #tpu.memory_space<vmem>>, %arg5: memref<16x128xf32, #tpu.memory_space<vmem>>, %arg6: memref<16x1xf32, #tpu.memory_space<vmem>>, %arg7: memref<16x1xf32, #tpu.memory_space<vmem>>, %arg8: memref<16x1xf32, #tpu.memory_space<vmem>>) attributes {dimension_semantics = [#tpu.dimension_semantics<parallel>, #tpu.dimension_semantics<arbitrary>], iteration_bounds = array<i64: 1, 1>, scalar_prefetch = 0 : i64, scratch_operands = 2 : i64, tpu.core_type = #tpu.core_type<tc>, window_params = [{transform_indices = @transform_0, window_bounds = array<i64: 16, 128>}, {transform_indices = @transform_1, window_bounds = array<i64: 16, 128>}, {transform_indices = @transform_2, window_bounds = array<i64: 1, 128>}, {transform_indices = @transform_3, window_bounds = array<i64: 16, 128>}, {transform_indices = @transform_4, window_bounds = array<i64: 16, 1>}]} {
    %c0_i32 = arith.constant 0 : i32
    %0 = arith.cmpi eq, %arg1, %c0_i32 : i32
    %1 = arith.extui %0 : i1 to i32
    %c0_i32_0 = arith.constant 0 : i32
    %2 = arith.cmpi ne, %1, %c0_i32_0 : i32
    scf.if %2 {
      %cst_24 = arith.constant 0.000000e+00 : f32
      %40 = vector.broadcast %cst_24 : f32 to vector<16x1xf32>
      %c0_25 = arith.constant 0 : index
      %c0_26 = arith.constant 0 : index
      %41 = vector.load %arg7[%c0_25, %c0_26] : memref<16x1xf32, #tpu.memory_space<vmem>>, vector<16x1xf32>
      tpu.vector_store %arg7[%c0_25, %c0_26], %40 {strides = array<i32>} : memref<16x1xf32, #tpu.memory_space<vmem>>, vector<16x1xf32>,
      %cst_27 = arith.constant 0.000000e+00 : f32
      %42 = vector.broadcast %cst_27 : f32 to vector<16x1xf32>
      %c0_28 = arith.constant 0 : index
      %c0_29 = arith.constant 0 : index
      %43 = vector.load %arg8[%c0_28, %c0_29] : memref<16x1xf32, #tpu.memory_space<vmem>>, vector<16x1xf32>
      tpu.vector_store %arg8[%c0_28, %c0_29], %42 {strides = array<i32>} : memref<16x1xf32, #tpu.memory_space<vmem>>, vector<16x1xf32>,
    } else {
    }
    %c0 = arith.constant 0 : index
    %c0_1 = arith.constant 0 : index
    %3 = vector.load %arg2[%c0, %c0_1] : memref<16x128xf32, #tpu.memory_space<vmem>>, vector<16x128xf32>
    %c0_2 = arith.constant 0 : index
    %c0_3 = arith.constant 0 : index
    %4 = vector.load %arg3[%c0_2, %c0_3] : memref<16x128xf32, #tpu.memory_space<vmem>>, vector<16x128xf32>
    %c0_4 = arith.constant 0 : index
    %c0_5 = arith.constant 0 : index
    %5 = vector.load %arg4[%c0_4, %c0_5] : memref<1x128xf32, #tpu.memory_space<vmem>>, vector<1x128xf32>
    %cst = arith.constant 0.000000e+00 : f32
    %6 = vector.broadcast %cst : f32 to vector<16x128xf32>
    %7 = arith.subf %6, %3 : vector<16x128xf32>
    %cst_6 = arith.constant 0.000000e+00 : f32
    %8 = vector.broadcast %cst_6 : f32 to vector<16x128xf32>
    %9 = arith.maximumf %7, %8 : vector<16x128xf32>
    %10 = math.absf %3 : vector<16x128xf32>
    %cst_7 = arith.constant 0.000000e+00 : f32
    %11 = vector.broadcast %cst_7 : f32 to vector<16x128xf32>
    %12 = arith.subf %11, %10 : vector<16x128xf32>
    %13 = math.exp %12 : vector<16x128xf32>
    %14 = math.log1p %13 : vector<16x128xf32>
    %15 = arith.addf %9, %14 : vector<16x128xf32>
    %cst_8 = arith.constant 1.000000e+00 : f32
    %16 = vector.broadcast %cst_8 : f32 to vector<16x128xf32>
    %17 = arith.subf %16, %4 : vector<16x128xf32>
    %18 = arith.mulf %17, %3 : vector<16x128xf32>
    %19 = vector.broadcast %5 : vector<1x128xf32> to vector<16x128xf32>
    %20 = arith.mulf %19, %4 : vector<16x128xf32>
    %cst_9 = arith.constant 1.000000e+00 : f32
    %21 = vector.broadcast %cst_9 : f32 to vector<16x128xf32>
    %22 = arith.addf %21, %20 : vector<16x128xf32>
    %23 = arith.mulf %22, %15 : vector<16x128xf32>
    %24 = arith.addf %18, %23 : vector<16x128xf32>
    %c0_10 = arith.constant 0 : index
    %c0_11 = arith.constant 0 : index
    %25 = vector.load %arg5[%c0_10, %c0_11] : memref<16x128xf32, #tpu.memory_space<vmem>>, vector<16x128xf32>
    %c0_12 = arith.constant 0 : index
    %c0_13 = arith.constant 0 : index
    %26 = vector.load %arg7[%c0_12, %c0_13] : memref<16x1xf32, #tpu.memory_space<vmem>>, vector<16x1xf32>
    %27 = arith.mulf %24, %25 : vector<16x128xf32>
    %cst_14 = arith.constant dense<0.000000e+00> : vector<16xf32>
    %28 = vector.multi_reduction <add>, %27, %cst_14 [1] : vector<16x128xf32> to vector<16xf32>
    %29 = vector.shape_cast %28 : vector<16xf32> to vector<16x1xf32>
    %30 = arith.addf %26, %29 : vector<16x1xf32>
    %c0_15 = arith.constant 0 : index
    %c0_16 = arith.constant 0 : index
    %31 = vector.load %arg7[%c0_15, %c0_16] : memref<16x1xf32, #tpu.memory_space<vmem>>, vector<16x1xf32>
    tpu.vector_store %arg7[%c0_15, %c0_16], %30 {strides = array<i32>} : memref<16x1xf32, #tpu.memory_space<vmem>>, vector<16x1xf32>,
    %c0_17 = arith.constant 0 : index
    %c0_18 = arith.constant 0 : index
    %32 = vector.load %arg8[%c0_17, %c0_18] : memref<16x1xf32, #tpu.memory_space<vmem>>, vector<16x1xf32>
    %cst_19 = arith.constant dense<0.000000e+00> : vector<16xf32>
    %33 = vector.multi_reduction <add>, %25, %cst_19 [1] : vector<16x128xf32> to vector<16xf32>
    %34 = vector.shape_cast %33 : vector<16xf32> to vector<16x1xf32>
    %35 = arith.addf %32, %34 : vector<16x1xf32>
    %c0_20 = arith.constant 0 : index
    %c0_21 = arith.constant 0 : index
    %36 = vector.load %arg8[%c0_20, %c0_21] : memref<16x1xf32, #tpu.memory_space<vmem>>, vector<16x1xf32>
    tpu.vector_store %arg8[%c0_20, %c0_21], %35 {strides = array<i32>} : memref<16x1xf32, #tpu.memory_space<vmem>>, vector<16x1xf32>,
    %c0_i32_22 = arith.constant 0 : i32
    %37 = arith.cmpi eq, %arg1, %c0_i32_22 : i32
    %38 = arith.extui %37 : i1 to i32
    %c0_i32_23 = arith.constant 0 : i32
    %39 = arith.cmpi ne, %38, %c0_i32_23 : i32
    scf.if %39 {
      %c0_24 = arith.constant 0 : index
      %c0_25 = arith.constant 0 : index
      %40 = vector.load %arg7[%c0_24, %c0_25] : memref<16x1xf32, #tpu.memory_space<vmem>>, vector<16x1xf32>
      %c0_26 = arith.constant 0 : index
      %c0_27 = arith.constant 0 : index
      %41 = vector.load %arg8[%c0_26, %c0_27] : memref<16x1xf32, #tpu.memory_space<vmem>>, vector<16x1xf32>
      %cst_28 = arith.constant 9.99999993E-9 : f32
      %42 = vector.broadcast %cst_28 : f32 to vector<16x1xf32>
      %43 = arith.addf %41, %42 : vector<16x1xf32>
      %44 = arith.divf %40, %43 : vector<16x1xf32>
      %c0_29 = arith.constant 0 : index
      %c0_30 = arith.constant 0 : index
      %45 = vector.load %arg6[%c0_29, %c0_30] : memref<16x1xf32, #tpu.memory_space<vmem>>, vector<16x1xf32>
      tpu.vector_store %arg6[%c0_29, %c0_30], %44 {strides = array<i32>} : memref<16x1xf32, #tpu.memory_space<vmem>>, vector<16x1xf32>,
    } else {
    }
    return
  }
  func.func @transform_0(%arg0: i32, %arg1: i32) -> (i32, i32) {
    %c0_i32 = arith.constant 0 : i32
    return %arg0, %arg1 : i32, i32
  }
  func.func @transform_1(%arg0: i32, %arg1: i32) -> (i32, i32) {
    %c0_i32 = arith.constant 0 : i32
    return %arg0, %arg1 : i32, i32
  }
  func.func @transform_2(%arg0: i32, %arg1: i32) -> (i32, i32) {
    %c0_i32 = arith.constant 0 : i32
    %c0_i32_0 = arith.constant 0 : i32
    return %c0_i32, %arg1 : i32, i32
  }
  func.func @transform_3(%arg0: i32, %arg1: i32) -> (i32, i32) {
    %c0_i32 = arith.constant 0 : i32
    return %arg0, %arg1 : i32, i32
  }
  func.func @transform_4(%arg0: i32, %arg1: i32) -> (i32, i32) {
    %c0_i32 = arith.constant 0 : i32
    %c0_i32_0 = arith.constant 0 : i32
    return %arg0, %c0_i32 : i32, i32
  }
}

</mosaic_0001>

<bundles_post_ra>
// kernel: tpu_custom_call.1
= control target key start
LH: loop header
LB: loop body
LE: loop exit
PB: predicated region body
PF: predicated region fallthrough
CT: control target
= control target key end

     0   :  { %9 = vsyncpa [#allocation5], 0  ;;  %s351_s0 = inlined_call_operand.hbm [shape: f32[16,128], index: 0, kind: input, shape index: {}]   ;;  %s352_s1 = inlined_call_operand.hbm [shape: f32[16,128], index: 1, kind: input, shape index: {}]   ;;  %s353_s2 = inlined_call_operand.vmem [shape: f32[1,128], index: 2, kind: input, shape index: {}]   ;;  %s354_s3 = inlined_call_operand.hbm [shape: f32[16,128], index: 3, kind: input, shape index: {}]   ;;  %s355_s4 = inlined_call_operand.vmem [shape: f32[16,1], index: 4, kind: output, shape index: {}]  }
   0x1   :  { %10 = vsyncpa [#allocation7], 0  ;;  %s28_s17 = sshll.u32 %s352_s1, 4  ;;  %s292_s18 = smov [#allocation6]   ;;  %s29_s17 = int_to_ptr.hbm [resolvable:$true] %s28_s17 }
   0x2   :  { %s30_s19 = sshll.u32 %s292_s18, 4  ;;  %s15_s22 = sshll.u32 %s351_s0, 4  ;;  %s31_s19 = int_to_ptr.vmem [resolvable:$true] %s30_s19  ;;  %s16_s22 = int_to_ptr.hbm [resolvable:$true] %s15_s22 }
   0x3   :  { %s293_s23 = smov 128   ;;  %s294_s24 = smov 8  }
   0x4   :  { %36 = dma.hbm_to_vmem [thread:$0]  %s29_s17, 256, %s31_s19, [#allocation7], %s293_s23, %s293_s23, %s294_s24  }
   0x5   :  { %s295_s25 = smov [#allocation4]   ;;  %s43_s29 = sshll.u32 %s354_s3, 4  ;;  %s44_s29 = int_to_ptr.hbm [resolvable:$true] %s43_s29 }
   0x6   :  { %s17_s26 = sshll.u32 %s295_s25, 4  ;;  %s296_s1 = smov [#allocation8]   ;;  %s18_s26 = int_to_ptr.vmem [resolvable:$true] %s17_s26 }
   0x7   :  { %23 = dma.hbm_to_vmem [thread:$0]  %s16_s22, 256, %s18_s26, [#allocation5], %s293_s23, %s293_s23, %s294_s24  }
   0x8   :  { %s45_s30 = sshll.u32 %s296_s1, 4  ;;  %s46_s30 = int_to_ptr.vmem [resolvable:$true] %s45_s30 }
   0x9   :  { %51 = dma.hbm_to_vmem [thread:$0]  %s44_s29, 256, %s46_s30, [#allocation7], %s293_s23, %s293_s23, %s294_s24  }
   0xa   :  { %288 = dma.done.wait [#allocation5], 256  }
   0xb   :  { %289 = vsyncadd [#allocation5], 4294967040 }
   0xc   :  { %290 = dma.done.wait [#allocation7], 512  }
   0xd   :  { %291 = vsyncadd [#allocation7], 4294966784  ;;  %v125_v0 = vld [vmem:[#allocation8] sm:$0xff]  ;;  %v74_v3 = vld [vmem:[#allocation4 + $0x8] sm:$0xff]  ;;  %vm68_vm0 = vcmask 7168   ;;  %v297_v10 = vmov 0.0  }
   0xe   :  { %v73_v1 = vld [vmem:[#allocation4] sm:$0xff]  ;;  %142 = vadd.xlane.f32.xlu0 %v125_v0  ;;  %v83_v5 = vand.u32 2147483647, %v74_v3  ;;  %v126_v8 = vld [vmem:[#allocation8 + $0x8] sm:$0xff]  ;;  %71 = vst.msk [vmem:[#allocation3] sm:$0xff] %vm68_vm0, %v297_v10  ;;  %v75_v17 = vld [vmem:[#allocation6] sm:$0xff] }
   0xf   :  { %v82_v2 = vand.u32 2147483647, %v73_v1  ;;  %69 = vst.msk [vmem:[#allocation2] sm:$0xff] %vm68_vm0, %v297_v10  ;;  %v203_v15 = vld [vmem:[%s353_s2] ss:$0 sm:$0xff]  ;;  %v78_v20 = vsub.f32 0.0, %v73_v1 }
  0x10   :  { %v85_v7 = vsub.f32 0.0, %v83_v5  ;;  %70 = vst.msk [vmem:[#allocation2 + $0x8] sm:$0xff] %vm68_vm0, %v297_v10  ;;  %v76_v22 = vld [vmem:[#allocation6 + $0x8] sm:$0xff]  ;;  %v117_v24 = vmul.f32 %v203_v15, %v75_v17  ;;  %v79_v25 = vsub.f32 0.0, %v74_v3  ;;  %v110_v30 = vsub.f32 1.0, %v75_v17 }
  0x11   :  { %v84_v4 = vsub.f32 0.0, %v82_v2  ;;  %72 = vst.msk [vmem:[#allocation3 + $0x8] sm:$0xff] %vm68_vm0, %v297_v10  ;;  %v80_v29 = vmax.f32 %v78_v20, 0.0  ;;  %v118_v31 = vmul.f32 %v203_v15, %v76_v22  ;;  %v111_v41 = vsub.f32 1.0, %v76_v22 }
  0x12   :  { %v88_v9 = vmul.f32 1.442695, %v85_v7  ;;  %v119_v35 = vadd.f32 1.0, %v117_v24  ;;  %v81_v36 = vmax.f32 %v79_v25, 0.0  ;;  %v112_v40 = vmul.f32 %v110_v30, %v73_v1 }
  0x13   :  { %v86_v6 = vmul.f32 1.442695, %v84_v4  ;;  %v120_v42 = vadd.f32 1.0, %v118_v31  ;;  %v113_v47 = vmul.f32 %v111_v41, %v74_v3 }
  0x15   :  { %204 = vpow2.f32 %v86_v6  ;;  %v140_v52 = vld [vmem:[#allocation3] sm:$0xff] }
  0x16   :  { %144 = vadd.xlane.f32.xlu0 %v126_v8  ;;  %206 = vpow2.f32 %v88_v9  ;;  %v127_v2 = vld [vmem:[#allocation2] sm:$0xff] }
  0x18   :  { %v141_v55 = vld [vmem:[#allocation3 + $0x8] sm:$0xff] }
  0x1b   :  { %v205_v11 = vpop.eup %204 }
  0x1c   :  { %v90_v12 = vadd.f32 1.0, %v205_v11  ;;  %v93_v13 = vmul.f32 -0.5, %v205_v11  ;;  %v207_v14 = vpop.eup %206  ;;  %v96_v21 = vand.u32 2147483647, %v205_v11 }
  0x1d   :  { %v99_v16 = vadd.f32 1.0, %v207_v14  ;;  %v102_v19 = vmul.f32 -0.5, %v207_v14  ;;  %v105_v26 = vand.u32 2147483647, %v207_v14 }
  0x1e   :  { %208 = vlog2.f32 %v90_v12  ;;  %v94_v18 = vadd.f32 1.0, %v93_v13  ;;  %vm97_vm1 = vcmp.lt.f32.partialorder %v96_v21, 0.0004427343  ;;  %v128_v12 = vld [vmem:[#allocation2 + $0x8] sm:$0xff] }
  0x1f   :  { %210 = vlog2.f32 %v99_v16  ;;  %v103_v23 = vadd.f32 1.0, %v102_v19  ;;  %vm106_vm2 = vcmp.lt.f32.partialorder %v105_v26, 0.0004427343 }
  0x20   :  { %v95_v27 = vmul.f32 %v205_v11, %v94_v18 }
  0x21   :  { %v104_v33 = vmul.f32 %v207_v14, %v103_v23 }
  0x24   :  { %v209_v28 = vpop.eup %208 }
  0x25   :  { %v92_v32 = vmul.f32 0.6931472, %v209_v28  ;;  %v211_v34 = vpop.eup %210 }
  0x26   :  { %v101_v38 = vmul.f32 0.6931472, %v211_v34 }
  0x27   :  { %v98_v37 = vsel %vm97_vm1, %v95_v27, %v92_v32 }
  0x28   :  { %v108_v39 = vadd.f32 %v98_v37, %v80_v29  ;;  %v107_v43 = vsel %vm106_vm2, %v104_v33, %v101_v38 }
  0x29   :  { %v109_v45 = vadd.f32 %v107_v43, %v81_v36 }
  0x2a   :  { %v121_v44 = vmul.f32 %v119_v35, %v108_v39 }
  0x2b   :  { %v122_v48 = vmul.f32 %v120_v42, %v109_v45 }
  0x2c   :  { %v123_v46 = vadd.f32 %v121_v44, %v112_v40 }
  0x2d   :  { %v124_v50 = vadd.f32 %v122_v48, %v113_v47 }
  0x2e   :  { %v129_v49 = vmul.f32 %v125_v0, %v123_v46 }
  0x2f   :  { %v130_v51 = vmul.f32 %v126_v8, %v124_v50 }
  0x30   :  { %131 = vadd.xlane.f32.xlu1 %v129_v49 }
  0x38   :  { %133 = vadd.xlane.f32.xlu1 %v130_v51 }
  0x81   :  { %v143_v53 = vpop.xlane.xlu0 %142 }
  0x82   :  { %v146_v54 = vadd.f32 %v143_v53, %v140_v52 }
  0x84   :  { %148 = vst.msk [vmem:[#allocation3] sm:$0xff] %vm68_vm0, %v146_v54 }
  0x89   :  { %v145_v56 = vpop.xlane.xlu0 %144 }
  0x8a   :  { %v147_v57 = vadd.f32 %v145_v56, %v141_v55 }
  0x8b   :  { %v155_v58 = vld [vmem:[#allocation3] sm:$0xff] }
  0x8c   :  { %v157_v59 = vadd.f32 1e-08, %v155_v58  ;;  %149 = vst.msk [vmem:[#allocation3 + $0x8] sm:$0xff] %vm68_vm0, %v147_v57 }
  0x8e   :  { %212 = vrcp.f32 %v157_v59  ;;  %vm164_vm3 = vweird.f32 %v157_v59  ;;  %v170_v7 = vand.u32 2147483648, %v157_v59  ;;  %v168_v9 = vand.u32 2147483647, %v157_v59 }
  0x90   :  { %v171_v11 = vor.u32 1.1754944e-38, %v170_v7  ;;  %vm169_vm6 = vcmp.eq.f32.partialorder %v168_v9, 8.507059e+37 }
  0x93   :  { %v156_v60 = vld [vmem:[#allocation3 + $0x8] sm:$0xff] }
  0x94   :  { %v158_v61 = vadd.f32 1e-08, %v156_v60  ;;  %v213_v62 = vpop.eup %212 }
  0x95   :  { %v160_v63 = vmul.f32 %v213_v62, %v157_v59  ;;  %vm165_vm4 = vweird.f32 %v213_v62 }
  0x96   :  { %214 = vrcp.f32 %v158_v61  ;;  %vm166_vm5 = vmor %vm164_vm3, %vm165_vm4  ;;  %vm179_vm7 = vweird.f32 %v158_v61  ;;  %v185_v19 = vand.u32 2147483648, %v158_v61  ;;  %v183_v22 = vand.u32 2147483647, %v158_v61 }
  0x97   :  { %v161_v0 = vsub.f32 1.0, %v160_v63 }
  0x98   :  { %v186_v23 = vor.u32 1.1754944e-38, %v185_v19  ;;  %vm184_vm10 = vcmp.eq.f32.partialorder %v183_v22, 8.507059e+37 }
  0x99   :  { %v162_v4 = vmul.f32 %v213_v62, %v161_v0 }
  0x9b   :  { %v163_v8 = vadd.f32 %v213_v62, %v162_v4 }
  0x9c   :  { %v215_v1 = vpop.eup %214 }
  0x9d   :  { %v175_v3 = vmul.f32 %v215_v1, %v158_v61  ;;  %v167_v13 = vsel %vm166_vm5, %v213_v62, %v163_v8  ;;  %vm180_vm8 = vweird.f32 %v215_v1 }
  0x9e   :  { %v172_v18 = vsel %vm169_vm6, %v171_v11, %v167_v13  ;;  %vm181_vm9 = vmor %vm179_vm7, %vm180_vm8 }
  0x9f   :  { %v176_v10 = vsub.f32 1.0, %v175_v3 }
  0xa1   :  { %v177_v14 = vmul.f32 %v215_v1, %v176_v10 }
  0xa3   :  { %v132_v5 = vpop.xlane.xlu1 %131  ;;  %v178_v21 = vadd.f32 %v215_v1, %v177_v14 }
  0xa4   :  { %v135_v6 = vadd.f32 %v132_v5, %v127_v2 }
  0xa5   :  { %v182_v24 = vsel %vm181_vm9, %v215_v1, %v178_v21 }
  0xa6   :  { %138 = vst.msk [vmem:[#allocation2] sm:$0xff] %vm68_vm0, %v135_v6  ;;  %v187_v26 = vsel %vm184_vm10, %v186_v23, %v182_v24 }
  0xab   :  { %v134_v15 = vpop.xlane.xlu1 %133 }
  0xac   :  { %v136_v16 = vadd.f32 %v134_v15, %v128_v12 }
  0xad   :  { %v153_v17 = vld [vmem:[#allocation2] sm:$0xff] }
  0xae   :  { %v173_v20 = vmul.f32 %v172_v18, %v153_v17  ;;  %139 = vst.msk [vmem:[#allocation2 + $0x8] sm:$0xff] %vm68_vm0, %v136_v16 }
  0xb0   :  { %189 = vst.msk [vmem:[%s355_s4] sm:$0xff] %vm68_vm0, %v173_v20 }
  0xb5   :  { %v154_v25 = vld [vmem:[#allocation2 + $0x8] sm:$0xff] }
  0xb6   :  { %v188_v27 = vmul.f32 %v187_v26, %v154_v25 }
  0xb8   :  { %190 = vst.msk [vmem:[%s355_s4 + $0x8] sm:$0xff] %vm68_vm0, %v188_v27 }
  0xb9   :  { %195 = vsyncpa [#allocation5], 1 }
  0xba   :  { %196 = vsyncpa [#allocation7], 1 }

</bundles_post_ra>
